<compile_context>
chip_gen: v5e
topology: v5e:2x2
jax: 0.10.0
libtpu: 0.0.40
codegen_flags: <defaults>
</compile_context>

<pallas_src>
import jax
import jax.numpy as jnp
from jax.experimental import pallas as pl
from jax.experimental.pallas import tpu as pltpu

# t5-small hidden dim per MODELS_DIMS
DIM = 512
OUTPUT_DIM = 256
VOCAB = 1000

TM_MAX = 1024  # row-tile size ceiling (multiple of 256 and 128)


def _round_up(x: int, m: int) -> int:
    return (x + m - 1) // m * m


def t5cond_kernel(x_ref, w_ref, b_ref, m_ref, o_ref):
    # In-kernel f32 -> bf16 cast of the activations (MXU-native operands,
    # f32 accumulation); bias add + padding-mask multiply stay f32.
    x = x_ref[...].astype(jnp.bfloat16)
    y = jnp.dot(x, w_ref[...], preferred_element_type=jnp.float32)
    m = m_ref[...].astype(jnp.float32)
    o_ref[...] = ((y + b_ref[...]) * m).astype(o_ref.dtype)


def t5_conditioner_forward(last_hidden_state, attention_mask, w_bf16, b, *, tm=None):
    """last_hidden_state: [B, T, DIM] f32 (stand-in for t5(...).last_hidden_state),
    attention_mask: [B, T] int32, w_bf16: [DIM, OUTPUT_DIM] bf16 (transposed
    nn.Linear weight, pre-cast once), b: [OUTPUT_DIM] f32.
    Returns (embeds [B, T, OUTPUT_DIM] f32, mask [B, T] int32)."""
    B, T, D = last_hidden_state.shape
    O = w_bf16.shape[1]
    M = B * T

    # Row tile: as large as TM_MAX; single block for small M; >= 2 blocks for
    # M > 512 so the parallel grid axis uses both v7x TensorCores.
    if tm is None:
        if M > 512:
            tm = min(TM_MAX, _round_up(pl.cdiv(M, 2), 256))
        else:
            tm = _round_up(M, 8)
    tm = max(8, _round_up(tm, 8))   # f32 sublane packing needs multiples of 8

    x = last_hidden_state.reshape(M, D)                     # f32, no copy/cast
    m = attention_mask.reshape(M, 1)                        # int32, cast in-kernel
    b2 = b.astype(jnp.float32).reshape(1, O)

    out = pl.pallas_call(
        t5cond_kernel,
        out_shape=jax.ShapeDtypeStruct((M, O), jnp.float32),
        grid_spec=pltpu.PrefetchScalarGridSpec(
            num_scalar_prefetch=0,
            grid=(pl.cdiv(M, tm),),
            in_specs=[
                pl.BlockSpec((tm, D), lambda i: (i, 0)),   # hidden-state row tile (f32)
                pl.BlockSpec((D, O), lambda i: (0, 0)),    # bf16 projection weight, VMEM-resident
                pl.BlockSpec((1, O), lambda i: (0, 0)),    # bias, VMEM-resident
                pl.BlockSpec((tm, 1), lambda i: (i, 0)),   # per-row padding mask (int32)
            ],
            out_specs=pl.BlockSpec((tm, O), lambda i: (i, 0)),
        ),
        compiler_params=pltpu.CompilerParams(
            dimension_semantics=("parallel",)),
    )(x, w_bf16, b2, m)

    embeds = out.reshape(B, T, O)
    return embeds, attention_mask


def _reference(last_hidden_state, attention_mask, w_t, b):
    """Plain-JAX reference with the same bf16-rounded operands, f32 math."""
    B, T, D = last_hidden_state.shape
    x = last_hidden_state.astype(jnp.bfloat16).astype(jnp.float32).reshape(-1, D)
    w = w_t.astype(jnp.bfloat16).astype(jnp.float32)
    y = jnp.dot(x, w, precision=jax.lax.Precision.HIGHEST) + b.astype(jnp.float32)
    y = y.reshape(B, T, -1)
    return y * attention_mask[..., None].astype(jnp.float32)


if __name__ == "__main__":
    key = jax.random.PRNGKey(0)
    k_emb, k_ids, k_w, k_b = jax.random.split(key, 4)

    # --- output_proj parameters (nn.Linear(DIM, OUTPUT_DIM)), deterministic init ---
    bound = 1.0 / (DIM ** 0.5)
    w = jax.random.uniform(k_w, (OUTPUT_DIM, DIM), jnp.float32, -bound, bound)  # PyTorch layout
    b = jax.random.uniform(k_b, (OUTPUT_DIM,), jnp.float32, -bound, bound)
    w_t = w.T                                  # [DIM, OUTPUT_DIM] for the kernel
    w_bf = w_t.astype(jnp.bfloat16)            # cast ONCE, not per forward

    embed_table = jax.random.normal(k_emb, (VOCAB, DIM), dtype=jnp.float32) * 0.02

    # --- test 1: demo-sized batch (B=2, T=8) -> single-block pallas_call ---
    B, T = 2, 8
    input_ids = jax.random.randint(k_ids, (B, T), 0, VOCAB, dtype=jnp.int32)
    lengths = jnp.array([8, 5], dtype=jnp.int32)
    attention_mask = (jnp.arange(T)[None, :] < lengths[:, None]).astype(jnp.int32)
    last_hidden_state = embed_table[input_ids]  # [B, T, DIM] ~ t5 last_hidden_state

    embeds, mask = t5_conditioner_forward(last_hidden_state, attention_mask, w_bf, b)
    embeds = jax.block_until_ready(embeds)

    ref = _reference(last_hidden_state, attention_mask, w_t, b)
    assert embeds.shape == (B, T, OUTPUT_DIM)
    assert mask.shape == (B, T)
    assert jnp.allclose(embeds, ref, atol=1e-4, rtol=1e-4)

    # --- test 2: non-divisible M with explicit tm -> multi-step grid + ragged tail ---
    B2, T2 = 2, 72
    ids2 = jax.random.randint(k_ids, (B2, T2), 0, VOCAB, dtype=jnp.int32)
    lengths2 = jnp.array([72, 50], dtype=jnp.int32)
    mask2 = (jnp.arange(T2)[None, :] < lengths2[:, None]).astype(jnp.int32)
    hidden2 = embed_table[ids2]

    embeds2, _ = t5_conditioner_forward(hidden2, mask2, w_bf, b, tm=64)
    embeds2 = jax.block_until_ready(embeds2)

    ref2 = _reference(hidden2, mask2, w_t, b)
    assert embeds2.shape == (B2, T2, OUTPUT_DIM)
    assert jnp.allclose(embeds2, ref2, atol=1e-4, rtol=1e-4)

    # --- test 3: M > 512 -> auto-tm keeps >= 2 blocks (v7x megacore path) ---
    B3, T3 = 2, 384
    ids3 = jax.random.randint(k_ids, (B3, T3), 0, VOCAB, dtype=jnp.int32)
    lengths3 = jnp.array([384, 200], dtype=jnp.int32)
    mask3 = (jnp.arange(T3)[None, :] < lengths3[:, None]).astype(jnp.int32)
    hidden3 = embed_table[ids3]

    embeds3, _ = t5_conditioner_forward(hidden3, mask3, w_bf, b)
    embeds3 = jax.block_until_ready(embeds3)

    ref3 = _reference(hidden3, mask3, w_t, b)
    assert embeds3.shape == (B3, T3, OUTPUT_DIM)
    assert jnp.allclose(embeds3, ref3, atol=1e-4, rtol=1e-4)

    print("KERNEL_OK")
</pallas_src>

<mosaic_0001>
module attributes {stable_mosaic.version = 11 : i64} {
  func.func @t5cond_kernel(%arg0: i32, %arg1: memref<16x512xf32, #tpu.memory_space<vmem>>, %arg2: memref<512x256xbf16, #tpu.memory_space<vmem>>, %arg3: memref<1x256xf32, #tpu.memory_space<vmem>>, %arg4: memref<16x1xi32, #tpu.memory_space<vmem>>, %arg5: memref<16x256xf32, #tpu.memory_space<vmem>>) attributes {dimension_semantics = [#tpu.dimension_semantics<parallel>], iteration_bounds = array<i64: 1>, scalar_prefetch = 0 : i64, scratch_operands = 0 : i64, tpu.core_type = #tpu.core_type<tc>, window_params = [{transform_indices = @transform_0, window_bounds = array<i64: 16, 512>}, {pipeline_mode = #tpu.pipeline_mode<synchronous>, transform_indices = @transform_1, window_bounds = array<i64: 512, 256>}, {pipeline_mode = #tpu.pipeline_mode<synchronous>, transform_indices = @transform_2, window_bounds = array<i64: 1, 256>}, {transform_indices = @transform_3, window_bounds = array<i64: 16, 1>}, {transform_indices = @transform_4, window_bounds = array<i64: 16, 256>}]} {
    %c0 = arith.constant 0 : index
    %c0_0 = arith.constant 0 : index
    %0 = vector.load %arg1[%c0, %c0_0] : memref<16x512xf32, #tpu.memory_space<vmem>>, vector<16x512xf32>
    %1 = arith.truncf %0 : vector<16x512xf32> to vector<16x512xbf16>
    %c0_1 = arith.constant 0 : index
    %c0_2 = arith.constant 0 : index
    %2 = vector.load %arg2[%c0_1, %c0_2] : memref<512x256xbf16, #tpu.memory_space<vmem>>, vector<512x256xbf16>
    %cst = arith.constant dense<0.000000e+00> : vector<16x256xf32>
    %3 = tpu.matmul %1, %2, %cst {dimension_numbers = #tpu.dot_dimension_numbers<[1], [0], [0], [1], [0, 0, 1, 1], [], []>} : vector<16x512xbf16>, vector<512x256xbf16>, vector<16x256xf32> -> vector<16x256xf32>
    %c0_3 = arith.constant 0 : index
    %c0_4 = arith.constant 0 : index
    %4 = vector.load %arg4[%c0_3, %c0_4] : memref<16x1xi32, #tpu.memory_space<vmem>>, vector<16x1xi32>
    %5 = arith.sitofp %4 : vector<16x1xi32> to vector<16x1xf32>
    %c0_5 = arith.constant 0 : index
    %c0_6 = arith.constant 0 : index
    %6 = vector.load %arg3[%c0_5, %c0_6] : memref<1x256xf32, #tpu.memory_space<vmem>>, vector<1x256xf32>
    %7 = vector.broadcast %6 : vector<1x256xf32> to vector<16x256xf32>
    %8 = arith.addf %3, %7 : vector<16x256xf32>
    %9 = vector.broadcast %5 : vector<16x1xf32> to vector<16x256xf32>
    %10 = arith.mulf %8, %9 : vector<16x256xf32>
    %c0_7 = arith.constant 0 : index
    %c0_8 = arith.constant 0 : index
    %11 = vector.load %arg5[%c0_7, %c0_8] : memref<16x256xf32, #tpu.memory_space<vmem>>, vector<16x256xf32>
    tpu.vector_store %arg5[%c0_7, %c0_8], %10 {strides = array<i32>} : memref<16x256xf32, #tpu.memory_space<vmem>>, vector<16x256xf32>,
    return
  }
  func.func @transform_0(%arg0: i32) -> (i32, i32) {
    %c0_i32 = arith.constant 0 : i32
    %c0_i32_0 = arith.constant 0 : i32
    return %arg0, %c0_i32 : i32, i32
  }
  func.func @transform_1(%arg0: i32) -> (i32, i32) {
    %c0_i32 = arith.constant 0 : i32
    %c0_i32_0 = arith.constant 0 : i32
    %c0_i32_1 = arith.constant 0 : i32
    return %c0_i32, %c0_i32_0 : i32, i32
  }
  func.func @transform_2(%arg0: i32) -> (i32, i32) {
    %c0_i32 = arith.constant 0 : i32
    %c0_i32_0 = arith.constant 0 : i32
    %c0_i32_1 = arith.constant 0 : i32
    return %c0_i32, %c0_i32_0 : i32, i32
  }
  func.func @transform_3(%arg0: i32) -> (i32, i32) {
    %c0_i32 = arith.constant 0 : i32
    %c0_i32_0 = arith.constant 0 : i32
    return %arg0, %c0_i32 : i32, i32
  }
  func.func @transform_4(%arg0: i32) -> (i32, i32) {
    %c0_i32 = arith.constant 0 : i32
    %c0_i32_0 = arith.constant 0 : i32
    return %arg0, %c0_i32 : i32, i32
  }
}

</mosaic_0001>

<bundles_post_ra>
// kernel: tpu_custom_call.1
= control target key start
LH: loop header
LB: loop body
LE: loop exit
PB: predicated region body
PF: predicated region fallthrough
CT: control target
= control target key end

     0   :  { %9 = vsyncpa [#allocation3], 0  ;;  %s1084_s0 = inlined_call_operand.hbm [shape: f32[16,512], index: 0, kind: input, shape index: {}]   ;;  %s1085_s1 = inlined_call_operand.hbm [shape: bf16[512,256], index: 1, kind: input, shape index: {}]   ;;  %s1086_s2 = inlined_call_operand.vmem [shape: f32[1,256], index: 2, kind: input, shape index: {}]   ;;  %s1087_s3 = inlined_call_operand.vmem [shape: s32[16,1], index: 3, kind: input, shape index: {}]   ;;  %s1088_s4 = inlined_call_operand.hbm [shape: f32[16,256], index: 4, kind: output, shape index: {}]  }
   0x1   :  { %10 = vsyncpa [#allocation6], 0 }
   0x2   :  { %11 = vsyncpa [#allocation4], 0  ;;  %s16_s17 = sshll.u32 %s1084_s0, 4  ;;  %s1015_s18 = smov [#allocation2]   ;;  %s17_s17 = int_to_ptr.hbm [resolvable:$true] %s16_s17 }
   0x3   :  { %s18_s19 = sshll.u32 %s1015_s18, 4  ;;  %s29_s22 = sshll.u32 %s1085_s1, 4  ;;  %s19_s19 = int_to_ptr.vmem [resolvable:$true] %s18_s19  ;;  %s30_s22 = int_to_ptr.hbm [resolvable:$true] %s29_s22 }
   0x4   :  { %s1016_s23 = smov 512   ;;  %s1017_s24 = smov 32  }
   0x5   :  { %24 = dma.hbm_to_vmem [thread:$0]  %s17_s17, 1024, %s19_s19, [#allocation3], %s1016_s23, %s1016_s23, %s1017_s24  }
   0x6   :  { %s1018_s25 = smov [#allocation5]   ;;  %s1019_s27 = smov 128  }
   0x7   :  { %s31_s26 = sshll.u32 %s1018_s25, 4  ;;  %s1020_s28 = smov 8   ;;  %s32_s26 = int_to_ptr.vmem [resolvable:$true] %s31_s26 }
   0x8   :  { %37 = dma.hbm_to_vmem [thread:$0]  %s30_s22, 8192, %s32_s26, [#allocation6], %s1019_s27, %s1019_s27, %s1020_s28  }
   0x9   :  { %1009 = dma.done.wait [#allocation3], 1024  }
   0xa   :  { %1010 = vsyncadd [#allocation3], 4294966272 }
   0xb   :  { %1011 = dma.done.wait [#allocation6], 8192  }
   0xc   :  { %1012 = vsyncadd [#allocation6], 4294959104  ;;  %v664_v0 = vld [vmem:[#allocation5 + $0x70] sm:$0xf]  ;;  %v877_v1 = vld [vmem:[#allocation5 + $0x74] sm:$0xf0] }
   0xd   :  { %v728_v2 = vld [vmem:[#allocation5 + $0xf0] sm:$0xf]  ;;  %v665_v3 = vor.u32 %v877_v1, %v664_v0  ;;  %v893_v4 = vld [vmem:[#allocation5 + $0xf4] sm:$0xf0]  ;;  %v656_v11 = vld [vmem:[#allocation5 + $0x60] sm:$0xf] }
   0xe   :  { %v792_v5 = vld [vmem:[#allocation5 + $0x170] sm:$0xf]  ;;  %v909_v6 = vld [vmem:[#allocation5 + $0x174] sm:$0xf0]  ;;  %v729_v7 = vor.u32 %v893_v4, %v728_v2  ;;  %v875_v13 = vld [vmem:[#allocation5 + $0x64] sm:$0xf0] }
   0xf   :  { %v793_v8 = vor.u32 %v909_v6, %v792_v5  ;;  %v856_v9 = vld [vmem:[#allocation5 + $0x1f0] sm:$0xf]  ;;  %v925_v10 = vld [vmem:[#allocation5 + $0x1f4] sm:$0xf0]  ;;  %456 = vmatpush.bf16.msra.mxu0 %v665_v3  ;;  %v720_v14 = vld [vmem:[#allocation5 + $0xe0] sm:$0xf]  ;;  %v657_v16 = vor.u32 %v875_v13, %v656_v11 }
  0x10   :  { %v857_v12 = vor.u32 %v925_v10, %v856_v9  ;;  %v891_v15 = vld [vmem:[#allocation5 + $0xe4] sm:$0xf0]  ;;  %470 = vmatpush.bf16.msra.mxu1 %v729_v7  ;;  %v784_v18 = vld [vmem:[#allocation5 + $0x160] sm:$0xf]  ;;  %v648_v23 = vld [vmem:[#allocation5 + $0x50] sm:$0xf] }
  0x11   :  { %484 = vmatpush.bf16.msra.mxu2 %v793_v8  ;;  %v721_v17 = vor.u32 %v891_v15, %v720_v14  ;;  %v907_v19 = vld [vmem:[#allocation5 + $0x164] sm:$0xf0]  ;;  %v848_v20 = vld [vmem:[#allocation5 + $0x1e0] sm:$0xf]  ;;  %v873_v24 = vld [vmem:[#allocation5 + $0x54] sm:$0xf0] }
  0x12   :  { %498 = vmatpush.bf16.msra.mxu3 %v857_v12  ;;  %v785_v21 = vor.u32 %v907_v19, %v784_v18  ;;  %v923_v22 = vld [vmem:[#allocation5 + $0x1e4] sm:$0xf0]  ;;  %v712_v26 = vld [vmem:[#allocation5 + $0xd0] sm:$0xf]  ;;  %v889_v27 = vld [vmem:[#allocation5 + $0xd4] sm:$0xf0]  ;;  %v649_v29 = vor.u32 %v873_v24, %v648_v23 }
  0x13   :  { %v849_v25 = vor.u32 %v923_v22, %v848_v20  ;;  %v776_v28 = vld [vmem:[#allocation5 + $0x150] sm:$0xf]  ;;  %457 = vmatpush.bf16.msra.mxu0 %v657_v16  ;;  %v905_v30 = vld [vmem:[#allocation5 + $0x154] sm:$0xf0]  ;;  %v713_v33 = vor.u32 %v889_v27, %v712_v26  ;;  %v640_v35 = vld [vmem:[#allocation5 + $0x40] sm:$0xf] }
  0x14   :  { %v840_v31 = vld [vmem:[#allocation5 + $0x1d0] sm:$0xf]  ;;  %v921_v32 = vld [vmem:[#allocation5 + $0x1d4] sm:$0xf0]  ;;  %471 = vmatpush.bf16.msra.mxu1 %v721_v17  ;;  %v777_v34 = vor.u32 %v905_v30, %v776_v28  ;;  %v871_v36 = vld [vmem:[#allocation5 + $0x44] sm:$0xf0] }
  0x15   :  { %485 = vmatpush.bf16.msra.mxu2 %v785_v21  ;;  %v704_v37 = vld [vmem:[#allocation5 + $0xc0] sm:$0xf]  ;;  %v841_v38 = vor.u32 %v921_v32, %v840_v31  ;;  %v887_v39 = vld [vmem:[#allocation5 + $0xc4] sm:$0xf0]  ;;  %v641_v44 = vor.u32 %v871_v36, %v640_v35  ;;  %v632_v47 = vld [vmem:[#allocation5 + $0x30] sm:$0xf] }
  0x16   :  { %499 = vmatpush.bf16.msra.mxu3 %v849_v25  ;;  %v768_v40 = vld [vmem:[#allocation5 + $0x140] sm:$0xf]  ;;  %v903_v41 = vld [vmem:[#allocation5 + $0x144] sm:$0xf0]  ;;  %v705_v45 = vor.u32 %v887_v39, %v704_v37  ;;  %v869_v48 = vld [vmem:[#allocation5 + $0x34] sm:$0xf0] }
  0x17   :  { %v832_v42 = vld [vmem:[#allocation5 + $0x1c0] sm:$0xf]  ;;  %v919_v43 = vld [vmem:[#allocation5 + $0x1c4] sm:$0xf0]  ;;  %458 = vmatpush.bf16.msra.mxu0 %v649_v29  ;;  %v769_v46 = vor.u32 %v903_v41, %v768_v40  ;;  %v696_v49 = vld [vmem:[#allocation5 + $0xb0] sm:$0xf]  ;;  %v633_v56 = vor.u32 %v869_v48, %v632_v47 }
  0x18   :  { %472 = vmatpush.bf16.msra.mxu1 %v713_v33  ;;  %v833_v50 = vor.u32 %v919_v43, %v832_v42  ;;  %v885_v51 = vld [vmem:[#allocation5 + $0xb4] sm:$0xf0]  ;;  %v760_v52 = vld [vmem:[#allocation5 + $0x130] sm:$0xf]  ;;  %v624_v59 = vld [vmem:[#allocation5 + $0x20] sm:$0xf] }
  0x19   :  { %486 = vmatpush.bf16.msra.mxu2 %v777_v34  ;;  %v901_v53 = vld [vmem:[#allocation5 + $0x134] sm:$0xf0]  ;;  %v824_v54 = vld [vmem:[#allocation5 + $0x1b0] sm:$0xf]  ;;  %v697_v57 = vor.u32 %v885_v51, %v696_v49  ;;  %v867_v60 = vld [vmem:[#allocation5 + $0x24] sm:$0xf0] }
  0x1a   :  { %500 = vmatpush.bf16.msra.mxu3 %v841_v38  ;;  %v917_v55 = vld [vmem:[#allocation5 + $0x1b4] sm:$0xf0]  ;;  %v761_v58 = vor.u32 %v901_v53, %v760_v52  ;;  %v688_v61 = vld [vmem:[#allocation5 + $0xa0] sm:$0xf]  ;;  %v883_v63 = vld [vmem:[#allocation5 + $0xa4] sm:$0xf0]  ;;  %v625_v4 = vor.u32 %v867_v60, %v624_v59 }
  0x1b   :  { %459 = vmatpush.bf16.msra.mxu0 %v641_v44  ;;  %v825_v62 = vor.u32 %v917_v55, %v824_v54  ;;  %v752_v0 = vld [vmem:[#allocation5 + $0x120] sm:$0xf]  ;;  %v899_v1 = vld [vmem:[#allocation5 + $0x124] sm:$0xf0]  ;;  %v616_v5 = vld [vmem:[#allocation5 + $0x10] sm:$0xf]  ;;  %v689_v6 = vor.u32 %v883_v63, %v688_v61 }
  0x1c   :  { %473 = vmatpush.bf16.msra.mxu1 %v705_v45  ;;  %v816_v2 = vld [vmem:[#allocation5 + $0x1a0] sm:$0xf]  ;;  %v915_v3 = vld [vmem:[#allocation5 + $0x1a4] sm:$0xf0]  ;;  %v753_v7 = vor.u32 %v899_v1, %v752_v0  ;;  %v865_v8 = vld [vmem:[#allocation5 + $0x14] sm:$0xf0] }
  0x1d   :  { %487 = vmatpush.bf16.msra.mxu2 %v769_v46  ;;  %v680_v9 = vld [vmem:[#allocation5 + $0x90] sm:$0xf]  ;;  %v881_v10 = vld [vmem:[#allocation5 + $0x94] sm:$0xf0]  ;;  %v817_v11 = vor.u32 %v915_v3, %v816_v2  ;;  %v608_v16 = vld [vmem:[#allocation5] sm:$0xf]  ;;  %v617_v18 = vor.u32 %v865_v8, %v616_v5 }
  0x1e   :  { %501 = vmatpush.bf16.msra.mxu3 %v833_v50  ;;  %v744_v12 = vld [vmem:[#allocation5 + $0x110] sm:$0xf]  ;;  %v897_v13 = vld [vmem:[#allocation5 + $0x114] sm:$0xf0]  ;;  %v863_v17 = vld [vmem:[#allocation5 + $0x4] sm:$0xf0]  ;;  %v681_v22 = vor.u32 %v881_v10, %v680_v9 }
  0x1f   :  { %460 = vmatpush.bf16.msra.mxu0 %v633_v56  ;;  %v808_v14 = vld [vmem:[#allocation5 + $0x190] sm:$0xf]  ;;  %v913_v15 = vld [vmem:[#allocation5 + $0x194] sm:$0xf0]  ;;  %v672_v19 = vld [vmem:[#allocation5 + $0x80] sm:$0xf]  ;;  %v745_v23 = vor.u32 %v897_v13, %v744_v12  ;;  %v609_v34 = vor.u32 %v863_v17, %v608_v16 }
  0x20   :  { %474 = vmatpush.bf16.msra.mxu1 %v697_v57  ;;  %v879_v20 = vld [vmem:[#allocation5 + $0x84] sm:$0xf0]  ;;  %v736_v21 = vld [vmem:[#allocation5 + $0x100] sm:$0xf]  ;;  %v809_v27 = vor.u32 %v913_v15, %v808_v14  ;;  %v876_v28 = vld [vmem:[#allocation5 + $0x74] sm:$0xf] }
  0x21   :  { %488 = vmatpush.bf16.msra.mxu2 %v761_v58  ;;  %v895_v24 = vld [vmem:[#allocation5 + $0x104] sm:$0xf0]  ;;  %v800_v25 = vld [vmem:[#allocation5 + $0x180] sm:$0xf]  ;;  %v666_v29 = vld [vmem:[#allocation5 + $0x78] sm:$0xf0]  ;;  %v673_v37 = vor.u32 %v879_v20, %v672_v19 }
  0x22   :  { %502 = vmatpush.bf16.msra.mxu3 %v825_v62  ;;  %v911_v26 = vld [vmem:[#allocation5 + $0x184] sm:$0xf0]  ;;  %v892_v30 = vld [vmem:[#allocation5 + $0xf4] sm:$0xf]  ;;  %v730_v31 = vld [vmem:[#allocation5 + $0xf8] sm:$0xf0]  ;;  %v737_v38 = vor.u32 %v895_v24, %v736_v21  ;;  %v669_v44 = vor.u32 %v876_v28, %v666_v29 }
  0x23   :  { %461 = vmatpush.bf16.msra.mxu0 %v625_v4  ;;  %v908_v32 = vld [vmem:[#allocation5 + $0x174] sm:$0xf]  ;;  %v794_v33 = vld [vmem:[#allocation5 + $0x178] sm:$0xf0]  ;;  %v874_v39 = vld [vmem:[#allocation5 + $0x64] sm:$0xf]  ;;  %v801_v43 = vor.u32 %v911_v26, %v800_v25  ;;  %v733_v50 = vor.u32 %v892_v30, %v730_v31 }
  0x24   :  { %475 = vmatpush.bf16.msra.mxu1 %v689_v6  ;;  %v924_v35 = vld [vmem:[#allocation5 + $0x1f4] sm:$0xf]  ;;  %v858_v36 = vld [vmem:[#allocation5 + $0x1f8] sm:$0xf0]  ;;  %v658_v40 = vld [vmem:[#allocation5 + $0x68] sm:$0xf0]  ;;  %v797_v51 = vor.u32 %v908_v32, %v794_v33 }
  0x25   :  { %489 = vmatpush.bf16.msra.mxu2 %v753_v7  ;;  %v52_v41 = vld [vmem:[#allocation2 + $0x10] sm:$0xff]  ;;  %v890_v45 = vld [vmem:[#allocation5 + $0xe4] sm:$0xf]  ;;  %v722_v46 = vld [vmem:[#allocation5 + $0xe8] sm:$0xf0]  ;;  %v1021_v49 = vmov 0   ;;  %v861_v55 = vor.u32 %v924_v35, %v858_v36  ;;  %v661_v0 = vor.u32 %v874_v39, %v658_v40 }
  0x26   :  { %503 = vmatpush.bf16.msra.mxu3 %v817_v11  ;;  %v56_v42 = vld [vmem:[#allocation2 + $0x30] sm:$0xff]  ;;  %v906_v47 = vld [vmem:[#allocation5 + $0x164] sm:$0xf]  ;;  %v786_v48 = vld [vmem:[#allocation5 + $0x168] sm:$0xf0]  ;;  %936 = vset.pattern.permute.xlu0 %v1021_v49  ;;  %v725_v2 = vor.u32 %v890_v45, %v722_v46  ;;  %s592_s9 = sshll.u32 %s1088_s4, 4  ;;  %s593_s9 = int_to_ptr.hbm [resolvable:$true] %s592_s9 }
  0x27   :  { %462 = vmatpush.bf16.msra.mxu0 %v617_v18  ;;  %v50_v52 = vld [vmem:[#allocation2] sm:$0xff]  ;;  %v53_v54 = vld [vmem:[#allocation2 + $0x18] sm:$0xff]  ;;  %v1056_v56 = vpack.c.bf16 %v56_v42, %v52_v41  ;;  %v51_v58 = vld [vmem:[#allocation2 + $0x8] sm:$0xff]  ;;  %v789_v3 = vor.u32 %v906_v47, %v786_v48  ;;  %s1023_s10 = smov 256   ;;  %s1024_s11 = smov 16  }
  0x28   :  { %476 = vmatpush.bf16.msra.mxu1 %v681_v22  ;;  %v54_v53 = vld [vmem:[#allocation2 + $0x20] sm:$0xff]  ;;  %v57_v57 = vld [vmem:[#allocation2 + $0x38] sm:$0xff]  ;;  %v55_v59 = vld [vmem:[#allocation2 + $0x28] sm:$0xff] }
  0x29   :  { %490 = vmatpush.bf16.msra.mxu2 %v745_v23  ;;  %v922_v60 = vld [vmem:[#allocation5 + $0x1e4] sm:$0xf]  ;;  %v850_v61 = vld [vmem:[#allocation5 + $0x1e8] sm:$0xf0]  ;;  %v1058_v62 = vpack.c.bf16 %v54_v53, %v50_v52  ;;  %v1060_v63 = vpack.c.bf16 %v57_v57, %v53_v54  ;;  %v1062_v1 = vpack.c.bf16 %v55_v59, %v51_v58  ;;  %v872_v4 = vld [vmem:[#allocation5 + $0x54] sm:$0xf] }
  0x2a   :  { %504 = vmatpush.bf16.msra.mxu3 %v809_v27  ;;  %v650_v5 = vld [vmem:[#allocation5 + $0x58] sm:$0xf0]  ;;  %v888_v6 = vld [vmem:[#allocation5 + $0xd4] sm:$0xf]  ;;  %v853_v7 = vor.u32 %v922_v60, %v850_v61  ;;  %v870_v16 = vld [vmem:[#allocation5 + $0x44] sm:$0xf] }
  0x2b   :  { %463 = vmatpush.bf16.msra.mxu0 %v609_v34  ;;  %v714_v8 = vld [vmem:[#allocation5 + $0xd8] sm:$0xf0]  ;;  %v904_v9 = vld [vmem:[#allocation5 + $0x154] sm:$0xf]  ;;  %v653_v13 = vor.u32 %v872_v4, %v650_v5  ;;  %v642_v17 = vld [vmem:[#allocation5 + $0x48] sm:$0xf0] }
  0x2c   :  { %477 = vmatpush.bf16.msra.mxu1 %v673_v37  ;;  %v778_v10 = vld [vmem:[#allocation5 + $0x158] sm:$0xf0]  ;;  %v920_v11 = vld [vmem:[#allocation5 + $0x1d4] sm:$0xf]  ;;  %v717_v14 = vor.u32 %v888_v6, %v714_v8  ;;  %v886_v18 = vld [vmem:[#allocation5 + $0xc4] sm:$0xf]  ;;  %v645_v25 = vor.u32 %v870_v16, %v642_v17 }
  0x2d   :  { %491 = vmatpush.bf16.msra.mxu2 %v737_v38  ;;  %v842_v12 = vld [vmem:[#allocation5 + $0x1d8] sm:$0xf0]  ;;  %v781_v15 = vor.u32 %v904_v9, %v778_v10  ;;  %v706_v20 = vld [vmem:[#allocation5 + $0xc8] sm:$0xf0]  ;;  %v902_v21 = vld [vmem:[#allocation5 + $0x144] sm:$0xf] }
  0x2e   :  { %505 = vmatpush.bf16.msra.mxu3 %v801_v43  ;;  %464 = vmatmul.bf16.vlgmr.msra.gmra.mxu0 %v1058_v62  ;;  %v845_v19 = vor.u32 %v920_v11, %v842_v12  ;;  %v770_v22 = vld [vmem:[#allocation5 + $0x148] sm:$0xf0]  ;;  %v918_v23 = vld [vmem:[#allocation5 + $0x1c4] sm:$0xf]  ;;  %v868_v26 = vld [vmem:[#allocation5 + $0x34] sm:$0xf]  ;;  %v709_v27 = vor.u32 %v886_v18, %v706_v20 }
  0x2f   :  { %512 = vmatpush.bf16.msrb.mxu0 %v669_v44  ;;  %478 = vmatmul.bf16.vlgmr.msra.gmra.mxu1 %v1062_v1  ;;  %v834_v24 = vld [vmem:[#allocation5 + $0x1c8] sm:$0xf0]  ;;  %v773_v28 = vor.u32 %v902_v21, %v770_v22  ;;  %v634_v29 = vld [vmem:[#allocation5 + $0x38] sm:$0xf0]  ;;  %v884_v30 = vld [vmem:[#allocation5 + $0xb4] sm:$0xf] }
  0x30   :  { %526 = vmatpush.bf16.msrb.mxu1 %v733_v50  ;;  %492 = vmatmul.bf16.vlgmr.msra.gmra.mxu2 %v1056_v56  ;;  %v126_v31 = vld [vmem:[%s1087_s3] sm:$0xff]  ;;  %v837_v32 = vor.u32 %v918_v23, %v834_v24  ;;  %v698_v33 = vld [vmem:[#allocation5 + $0xb8] sm:$0xf0]  ;;  %v900_v34 = vld [vmem:[#allocation5 + $0x134] sm:$0xf]  ;;  %v637_v39 = vor.u32 %v868_v26, %v634_v29 }
  0x31   :  { %540 = vmatpush.bf16.msrb.mxu2 %v797_v51  ;;  %506 = vmatmul.bf16.vlgmr.msra.gmra.mxu3 %v1060_v63  ;;  %v762_v35 = vld [vmem:[#allocation5 + $0x138] sm:$0xf0]  ;;  %v128_v36 = vcvt.s32.f32 %v126_v31  ;;  %v916_v37 = vld [vmem:[#allocation5 + $0x1b4] sm:$0xf]  ;;  %v866_v40 = vld [vmem:[#allocation5 + $0x24] sm:$0xf]  ;;  %v701_v41 = vor.u32 %v884_v30, %v698_v33 }
  0x32   :  { %554 = vmatpush.bf16.msrb.mxu3 %v861_v55  ;;  %v826_v38 = vld [vmem:[#allocation5 + $0x1b8] sm:$0xf0]  ;;  %v765_v42 = vor.u32 %v900_v34, %v762_v35  ;;  %v626_v43 = vld [vmem:[#allocation5 + $0x28] sm:$0xf0]  ;;  %v882_v44 = vld [vmem:[#allocation5 + $0xa4] sm:$0xf] }
  0x33   :  { %513 = vmatpush.bf16.msrb.mxu0 %v661_v0  ;;  %570 = vperm.xlu0 %936, %v128_v36   ;;  %v127_v45 = vld [vmem:[%s1087_s3 + $0x8] sm:$0xff]  ;;  %v829_v46 = vor.u32 %v916_v37, %v826_v38  ;;  %v898_v48 = vld [vmem:[#allocation5 + $0x124] sm:$0xf]  ;;  %v629_v52 = vor.u32 %v866_v40, %v626_v43  ;;  %v864_v57 = vld [vmem:[#allocation5 + $0x14] sm:$0xf] }
  0x34   :  { %527 = vmatpush.bf16.msrb.mxu1 %v725_v2  ;;  %v690_v47 = vld [vmem:[#allocation5 + $0xa8] sm:$0xf0]  ;;  %v914_v50 = vld [vmem:[#allocation5 + $0x1a4] sm:$0xf]  ;;  %v129_v53 = vcvt.s32.f32 %v127_v45  ;;  %v618_v58 = vld [vmem:[#allocation5 + $0x18] sm:$0xf0] }
  0x35   :  { %541 = vmatpush.bf16.msrb.mxu2 %v789_v3  ;;  %v754_v49 = vld [vmem:[#allocation5 + $0x128] sm:$0xf0]  ;;  %v693_v54 = vor.u32 %v882_v44, %v690_v47  ;;  %v880_v59 = vld [vmem:[#allocation5 + $0x94] sm:$0xf]  ;;  %v682_v61 = vld [vmem:[#allocation5 + $0x98] sm:$0xf0]  ;;  %v621_v5 = vor.u32 %v864_v57, %v618_v58 }
  0x36   :  { %555 = vmatpush.bf16.msrb.mxu3 %v853_v7  ;;  %v818_v51 = vld [vmem:[#allocation5 + $0x1a8] sm:$0xf0]  ;;  %v757_v55 = vor.u32 %v898_v48, %v754_v49  ;;  %v896_v0 = vld [vmem:[#allocation5 + $0x114] sm:$0xf]  ;;  %v746_v2 = vld [vmem:[#allocation5 + $0x118] sm:$0xf0]  ;;  %v685_v6 = vor.u32 %v880_v59, %v682_v61 }
  0x37   :  { %514 = vmatpush.bf16.msrb.mxu0 %v653_v13  ;;  %v821_v60 = vor.u32 %v914_v50, %v818_v51  ;;  %v912_v3 = vld [vmem:[#allocation5 + $0x194] sm:$0xf]  ;;  %v810_v4 = vld [vmem:[#allocation5 + $0x198] sm:$0xf0]  ;;  %v749_v7 = vor.u32 %v896_v0, %v746_v2  ;;  %v862_v8 = vld [vmem:[#allocation5 + $0x4] sm:$0xf] }
  0x38   :  { %528 = vmatpush.bf16.msrb.mxu1 %v717_v14  ;;  %v610_v9 = vld [vmem:[#allocation5 + $0x8] sm:$0xf0]  ;;  %v878_v10 = vld [vmem:[#allocation5 + $0x84] sm:$0xf]  ;;  %v813_v11 = vor.u32 %v912_v3, %v810_v4  ;;  %v130_v21 = vld [vmem:[%s1086_s2] sm:$0x3] }
  0x39   :  { %542 = vmatpush.bf16.msrb.mxu2 %v781_v15  ;;  %v674_v12 = vld [vmem:[#allocation5 + $0x88] sm:$0xf0]  ;;  %v894_v13 = vld [vmem:[#allocation5 + $0x104] sm:$0xf]  ;;  %v613_v17 = vor.u32 %v862_v8, %v610_v9  ;;  %v132_v22 = vperm.slane %v130_v21, 0  ;;  %s1022_s2 = smov [#allocation7]  }
  0x3a   :  { %556 = vmatpush.bf16.msrb.mxu3 %v845_v19  ;;  %v738_v14 = vld [vmem:[#allocation5 + $0x108] sm:$0xf0]  ;;  %v910_v15 = vld [vmem:[#allocation5 + $0x184] sm:$0xf]  ;;  %v677_v18 = vor.u32 %v878_v10, %v674_v12  ;;  %s590_s6 = sshll.u32 %s1022_s2, 4  ;;  %s591_s6 = int_to_ptr.vmem [resolvable:$true] %s590_s6 }
  0x3b   :  { %515 = vmatpush.bf16.msrb.mxu0 %v645_v25  ;;  %575 = vperm.xlu0 %936, %v129_v53   ;;  %v802_v16 = vld [vmem:[#allocation5 + $0x188] sm:$0xf0]  ;;  %v741_v19 = vor.u32 %v894_v13, %v738_v14 }
  0x3c   :  { %529 = vmatpush.bf16.msrb.mxu1 %v709_v27  ;;  %v805_v20 = vor.u32 %v910_v15, %v802_v16 }
  0x3d   :  { %543 = vmatpush.bf16.msrb.mxu2 %v773_v28 }
  0x3e   :  { %557 = vmatpush.bf16.msrb.mxu3 %v837_v32 }
  0x3f   :  { %516 = vmatpush.bf16.msrb.mxu0 %v637_v39  ;;  %v133_v39 = vperm.slane %v130_v21, 1 }
  0x40   :  { %530 = vmatpush.bf16.msrb.mxu1 %v701_v41 }
  0x41   :  { %544 = vmatpush.bf16.msrb.mxu2 %v765_v42 }
  0x42   :  { %558 = vmatpush.bf16.msrb.mxu3 %v829_v46 }
  0x43   :  { %517 = vmatpush.bf16.msrb.mxu0 %v629_v52 }
  0x44   :  { %531 = vmatpush.bf16.msrb.mxu1 %v693_v54 }
  0x45   :  { %545 = vmatpush.bf16.msrb.mxu2 %v757_v55 }
  0x46   :  { %559 = vmatpush.bf16.msrb.mxu3 %v821_v60 }
  0x47   :  { %518 = vmatpush.bf16.msrb.mxu0 %v621_v5 }
  0x48   :  { %532 = vmatpush.bf16.msrb.mxu1 %v685_v6 }
  0x49   :  { %546 = vmatpush.bf16.msrb.mxu2 %v749_v7 }
  0x4a   :  { %560 = vmatpush.bf16.msrb.mxu3 %v813_v11 }
  0x4b   :  { %519 = vmatpush.bf16.msrb.mxu0 %v613_v17 }
  0x4c   :  { %533 = vmatpush.bf16.msrb.mxu1 %v677_v18 }
  0x4d   :  { %547 = vmatpush.bf16.msrb.mxu2 %v741_v19 }
  0x4e   :  { %561 = vmatpush.bf16.msrb.mxu3 %v805_v20  ;;  %520 = vmatmul.bf16.vlgmr.msrb.gmra.mxu0 %v1058_v62 }
  0x4f   :  { %534 = vmatmul.bf16.vlgmr.msrb.gmra.mxu1 %v1062_v1 }
  0x50   :  { %548 = vmatmul.bf16.vlgmr.msrb.gmra.mxu2 %v1056_v56 }
  0x51   :  { %562 = vmatmul.bf16.vlgmr.msrb.gmra.mxu3 %v1060_v63 }
  0xa5   :  { %v571_v28 = vpop.permute.xlu0 %570 }
  0xab   :  { %v465_v23 = vpop.f32.mrf.mxu0 }
  0xac   :  { %v466_v24 = vadd.f32 %v465_v23, %v132_v22  ;;  %v479_v25 = vpop.f32.mrf.mxu1 }
  0xad   :  { %v576_v36 = vpop.permute.xlu0 %575 }
  0xae   :  { %v480_v26 = vadd.f32 %v479_v25, %v466_v24 }
  0xb3   :  { %v493_v27 = vpop.f32.mrf.mxu2  ;;  %v467_v31 = vpop.f32.mrf.mxu0 }
  0xb4   :  { %v494_v29 = vadd.f32 %v493_v27, %v480_v26  ;;  %v507_v30 = vpop.f32.mrf.mxu3  ;;  %v468_v1 = vadd.f32 %v467_v31, %v132_v22  ;;  %v481_v32 = vpop.f32.mrf.mxu1 }
  0xb6   :  { %v508_v62 = vadd.f32 %v507_v30, %v494_v29  ;;  %v482_v33 = vadd.f32 %v481_v32, %v468_v1 }
  0xb8   :  { %v578_v56 = vmul.f32 %v571_v28, %v508_v62 }
  0xba   :  { %582 = vst [vmem:[#allocation7] sm:$0xff] %v578_v56 }
  0xbb   :  { %v495_v63 = vpop.f32.mrf.mxu2 }
  0xbc   :  { %v496_v34 = vadd.f32 %v495_v63, %v482_v33  ;;  %v509_v35 = vpop.f32.mrf.mxu3 }
  0xbe   :  { %v510_v37 = vadd.f32 %v509_v35, %v496_v34 }
  0xc0   :  { %v580_v38 = vmul.f32 %v576_v36, %v510_v37 }
  0xc2   :  { %584 = vst [vmem:[#allocation7 + $0x10] sm:$0xff] %v580_v38 }
  0xcb   :  { %v521_v40 = vpop.f32.mrf.mxu0 }
  0xcc   :  { %v522_v41 = vadd.f32 %v521_v40, %v133_v39  ;;  %v535_v42 = vpop.f32.mrf.mxu1 }
  0xce   :  { %v536_v43 = vadd.f32 %v535_v42, %v522_v41 }
  0xd3   :  { %v549_v44 = vpop.f32.mrf.mxu2  ;;  %v523_v47 = vpop.f32.mrf.mxu0 }
  0xd4   :  { %v550_v45 = vadd.f32 %v549_v44, %v536_v43  ;;  %v563_v46 = vpop.f32.mrf.mxu3  ;;  %v524_v49 = vadd.f32 %v523_v47, %v133_v39  ;;  %v537_v51 = vpop.f32.mrf.mxu1 }
  0xd6   :  { %v564_v48 = vadd.f32 %v563_v46, %v550_v45  ;;  %v538_v52 = vadd.f32 %v537_v51, %v524_v49 }
  0xd8   :  { %v579_v50 = vmul.f32 %v571_v28, %v564_v48 }
  0xda   :  { %583 = vst [vmem:[#allocation7 + $0x8] sm:$0xff] %v579_v50 }
  0xdb   :  { %v551_v53 = vpop.f32.mrf.mxu2 }
  0xdc   :  { %v552_v54 = vadd.f32 %v551_v53, %v538_v52  ;;  %v565_v55 = vpop.f32.mrf.mxu3 }
  0xde   :  { %v566_v57 = vadd.f32 %v565_v55, %v552_v54 }
  0xe0   :  { %v581_v58 = vmul.f32 %v576_v36, %v566_v57 }
  0xe2   :  { %585 = vst [vmem:[#allocation7 + $0x18] sm:$0xff] %v581_v58 }
  0xe3   :  { %598 = dma.vmem_to_hbm [thread:$0]  %s591_s6, 512, %s593_s9, [#allocation4], %s1023_s10, %s1023_s10, %s1024_s11  }
  0xe4   :  { %1013 = dma.done.wait [#allocation4], 512  }
  0xe5   :  { %1014 = vsyncadd [#allocation4], 4294966784 }
  0xe6   :  { %603 = vsyncpa [#allocation3], 1 }
  0xe7   :  { %604 = vsyncpa [#allocation6], 1 }
  0xe8   :  { %605 = vsyncpa [#allocation4], 1 }

</bundles_post_ra>
